<compile_context>
chip_gen: v5e
topology: v5e:2x2
jax: 0.10.0
libtpu: 0.0.40
codegen_flags: <defaults>
</compile_context>

<pallas_src>
import functools
import math

import jax
import jax.numpy as jnp
import numpy as np
from jax.experimental import pallas as pl
from jax.experimental.pallas import tpu as pltpu


# ----------------------------- Pallas kernel -------------------------------


def _modconv_kernel(wmod_ref, x_ref, b_ref, o_ref, *, clamp):
    # wmod_ref: (1, C_out, C_in)  per-sample modulated 1x1 conv weight
    # x_ref:    (1, C_in, TS)     spatial tile, pixels on lanes
    # b_ref:    (C_out, 1)
    # o_ref:    (1, C_out, TS)
    y = jnp.dot(wmod_ref[0], x_ref[0], preferred_element_type=jnp.float32)  # (C_out, TS)
    y = y + b_ref[...]
    if clamp is not None:
        y = jnp.clip(y, -clamp, clamp)
    o_ref[0] = y.astype(o_ref.dtype)


# ------------------------------ Host wrapper -------------------------------


def _pick_spatial_tile(hw, max_tile):
    """Largest lane-friendly tile (multiple of 128) that divides HW, capped at max_tile."""
    if hw <= max_tile:
        return hw
    ts = (max_tile // 128) * 128
    while ts >= 128:
        if hw % ts == 0:
            return ts
        ts -= 128
    # TODO(synk): odd spatial sizes fall back to a single full-row block; pad+mask instead.
    return hw


def to_rgb_layer_forward(x_nchw, w_latent, params, *, conv_clamp=None, tile_spatial=2048):
    """x_nchw: (N, C_in, H, W) f32; w_latent: (N, w_dim) f32 -> (N, C_out, H, W) f32."""
    N, C_in, H, W = x_nchw.shape
    w_dim = w_latent.shape[1]
    aff_w = params["affine_weight"]      # (C_in, w_dim)
    aff_b = params["affine_bias"]        # (1, C_in)
    conv_w = params["conv_weight"]       # (C_out, C_in)  (kernel_size = 1)
    conv_b = params["conv_bias"]         # (1, C_out)
    C_out = conv_w.shape[0]

    fc_gain = 1.0 / math.sqrt(w_dim)             # FullyConnectedLayer weight_gain
    weight_gain = 1.0 / math.sqrt(C_in * 1 * 1)  # ToRGB weight_gain (kernel_size=1)

    # --- styles & modulated weights: a few KFLOPs, plain JAX (XLA fuses it) ---
    styles = (w_latent @ aff_w.T) * fc_gain + aff_b          # (N, C_in)
    styles = styles * weight_gain
    w_mod = conv_w[None, :, :] * styles[:, None, :]          # (N, C_out, C_in)
    w_mod = w_mod.astype(jnp.float32)
    b_col = conv_b.reshape(C_out, 1).astype(jnp.float32)     # (C_out, 1)

    # --- modulated 1x1 conv + bias + clamp, NCHW consumed directly -----------
    HW = H * W
    TS = _pick_spatial_tile(HW, tile_spatial)

    x_flat = x_nchw.reshape(N, C_in, HW)                     # free reshape of NCHW

    # VMEM budget: double-buffered input + output tiles (+ small weights), with headroom,
    # capped at 48 MiB so large tiles remain safe on v7x (64 MiB VMEM per TensorCore).
    tile_bytes = 4 * TS * (C_in + C_out)
    vmem_bytes = int(min(max(4 * tile_bytes + (1 << 20), 32 << 20), 48 << 20))

    y_flat = pl.pallas_call(
        functools.partial(_modconv_kernel, clamp=conv_clamp),
        out_shape=jax.ShapeDtypeStruct((N, C_out, HW), jnp.float32),
        grid=(N, HW // TS),
        in_specs=[
            pl.BlockSpec((1, C_out, C_in), lambda n, s: (n, 0, 0)),  # per-sample W_mod
            pl.BlockSpec((1, C_in, TS), lambda n, s: (n, 0, s)),     # x tile (pixels on lanes)
            pl.BlockSpec((C_out, 1), lambda n, s: (0, 0)),           # bias
        ],
        out_specs=pl.BlockSpec((1, C_out, TS), lambda n, s: (n, 0, s)),
        compiler_params=pltpu.CompilerParams(
            dimension_semantics=("parallel", "parallel"),
            vmem_limit_bytes=vmem_bytes,
        ),
    )(w_mod, x_flat, b_col)

    return y_flat.reshape(N, C_out, H, W)                    # free reshape back to NCHW


# --------------------------- Pure-JAX reference ----------------------------


def _reference(x_nchw, w_latent, params, conv_clamp):
    N, C_in, H, W = x_nchw.shape
    w_dim = w_latent.shape[1]
    fc_gain = 1.0 / math.sqrt(w_dim)
    weight_gain = 1.0 / math.sqrt(C_in)
    styles = (w_latent @ params["affine_weight"].T) * fc_gain + params["affine_bias"]
    styles = styles * weight_gain                                    # (N, C_in)
    xm = x_nchw * styles[:, :, None, None]                           # modulate
    y = jnp.einsum("nihw,oi->nohw", xm, params["conv_weight"])       # 1x1 conv
    y = y + params["conv_bias"].reshape(1, -1, 1, 1)
    if conv_clamp is not None:
        y = jnp.clip(y, -conv_clamp, conv_clamp)
    return y


# --------------------------------- Main ------------------------------------

if __name__ == "__main__":
    # Small shapes consistent with the module.
    N, C_in, C_out, H, W, w_dim = 2, 8, 3, 16, 16, 32
    conv_clamp = 256.0

    key = jax.random.PRNGKey(0)
    k_x, k_w, k_aw, k_cw = jax.random.split(key, 4)

    x = jax.random.normal(k_x, (N, C_in, H, W), jnp.float32)         # NCHW, like PyTorch
    w_latent = jax.random.normal(k_w, (N, w_dim), jnp.float32)

    params = {
        # fcl(w_dim, in_channels, bias_init=1): weight ~ randn, bias = 1
        "affine_weight": jax.random.normal(k_aw, (C_in, w_dim), jnp.float32),
        "affine_bias": jnp.ones((1, C_in), jnp.float32),
        # conv weight ~ randn([out, in, 1, 1]) -> squeezed to (out, in); bias = 0
        "conv_weight": jax.random.normal(k_cw, (C_out, C_in), jnp.float32),
        "conv_bias": jnp.zeros((1, C_out), jnp.float32),
    }

    out = to_rgb_layer_forward(x, w_latent, params, conv_clamp=conv_clamp)
    out = jax.block_until_ready(out)

    ref = _reference(x, w_latent, params, conv_clamp)
    np.testing.assert_allclose(np.asarray(out), np.asarray(ref), rtol=1e-5, atol=1e-5)

    print("KERNEL_OK")
</pallas_src>

<mosaic_0001>
module attributes {stable_mosaic.version = 11 : i64} {
  func.func @_modconv_kernel(%arg0: i32, %arg1: i32, %arg2: memref<1x3x8xf32, #tpu.memory_space<vmem>>, %arg3: memref<1x8x256xf32, #tpu.memory_space<vmem>>, %arg4: memref<3x1xf32, #tpu.memory_space<vmem>>, %arg5: memref<1x3x256xf32, #tpu.memory_space<vmem>>) attributes {dimension_semantics = [#tpu.dimension_semantics<parallel>, #tpu.dimension_semantics<parallel>], iteration_bounds = array<i64: 2, 1>, scalar_prefetch = 0 : i64, scratch_operands = 0 : i64, tpu.core_type = #tpu.core_type<tc>, window_params = [{transform_indices = @transform_0, window_bounds = array<i64: 1, 3, 8>}, {transform_indices = @transform_1, window_bounds = array<i64: 1, 8, 256>}, {pipeline_mode = #tpu.pipeline_mode<synchronous>, transform_indices = @transform_2, window_bounds = array<i64: 3, 1>}, {transform_indices = @transform_3, window_bounds = array<i64: 1, 3, 256>}]} {
    %c0 = arith.constant 0 : index
    %c0_0 = arith.constant 0 : index
    %c0_1 = arith.constant 0 : index
    %0 = vector.load %arg2[%c0, %c0_0, %c0_1] : memref<1x3x8xf32, #tpu.memory_space<vmem>>, vector<1x3x8xf32>
    %1 = vector.shape_cast %0 : vector<1x3x8xf32> to vector<3x8xf32>
    %c0_2 = arith.constant 0 : index
    %c0_3 = arith.constant 0 : index
    %c0_4 = arith.constant 0 : index
    %2 = vector.load %arg3[%c0_2, %c0_3, %c0_4] : memref<1x8x256xf32, #tpu.memory_space<vmem>>, vector<1x8x256xf32>
    %3 = vector.shape_cast %2 : vector<1x8x256xf32> to vector<8x256xf32>
    %cst = arith.constant dense<0.000000e+00> : vector<3x256xf32>
    %4 = tpu.matmul %1, %3, %cst {dimension_numbers = #tpu.dot_dimension_numbers<[1], [0], [0], [1], [0, 0, 1, 1], [], []>} : vector<3x8xf32>, vector<8x256xf32>, vector<3x256xf32> -> vector<3x256xf32>
    %c0_5 = arith.constant 0 : index
    %c0_6 = arith.constant 0 : index
    %5 = vector.load %arg4[%c0_5, %c0_6] : memref<3x1xf32, #tpu.memory_space<vmem>>, vector<3x1xf32>
    %6 = vector.broadcast %5 : vector<3x1xf32> to vector<3x256xf32>
    %7 = arith.addf %4, %6 : vector<3x256xf32>
    %cst_7 = arith.constant -2.560000e+02 : f32
    %cst_8 = arith.constant 2.560000e+02 : f32
    %8 = vector.broadcast %cst_7 : f32 to vector<3x256xf32>
    %9 = arith.maximumf %8, %7 : vector<3x256xf32>
    %10 = vector.broadcast %cst_8 : f32 to vector<3x256xf32>
    %11 = arith.minimumf %10, %9 : vector<3x256xf32>
    %c0_9 = arith.constant 0 : index
    %c0_10 = arith.constant 0 : index
    %c0_11 = arith.constant 0 : index
    %12 = vector.load %arg5[%c0_9, %c0_10, %c0_11] : memref<1x3x256xf32, #tpu.memory_space<vmem>>, vector<1x3x256xf32>
    %13 = vector.shape_cast %12 : vector<1x3x256xf32> to vector<3x256xf32>
    %14 = vector.shape_cast %11 : vector<3x256xf32> to vector<1x3x256xf32>
    tpu.vector_store %arg5[%c0_9, %c0_10, %c0_11], %14 {strides = array<i32>} : memref<1x3x256xf32, #tpu.memory_space<vmem>>, vector<1x3x256xf32>,
    return
  }
  func.func @transform_0(%arg0: i32, %arg1: i32) -> (i32, i32, i32) {
    %c0_i32 = arith.constant 0 : i32
    %c0_i32_0 = arith.constant 0 : i32
    %c0_i32_1 = arith.constant 0 : i32
    return %arg0, %c0_i32, %c0_i32_0 : i32, i32, i32
  }
  func.func @transform_1(%arg0: i32, %arg1: i32) -> (i32, i32, i32) {
    %c0_i32 = arith.constant 0 : i32
    %c0_i32_0 = arith.constant 0 : i32
    return %arg0, %c0_i32, %arg1 : i32, i32, i32
  }
  func.func @transform_2(%arg0: i32, %arg1: i32) -> (i32, i32) {
    %c0_i32 = arith.constant 0 : i32
    %c0_i32_0 = arith.constant 0 : i32
    %c0_i32_1 = arith.constant 0 : i32
    return %c0_i32, %c0_i32_0 : i32, i32
  }
  func.func @transform_3(%arg0: i32, %arg1: i32) -> (i32, i32, i32) {
    %c0_i32 = arith.constant 0 : i32
    %c0_i32_0 = arith.constant 0 : i32
    return %arg0, %c0_i32, %arg1 : i32, i32, i32
  }
}

</mosaic_0001>

<bundles_post_ra>
// kernel: tpu_custom_call.1
= control target key start
LH: loop header
LB: loop body
LE: loop exit
PB: predicated region body
PF: predicated region fallthrough
CT: control target
= control target key end

     0   :  { %8 = vsyncpa [#allocation3], 0  ;;  %s681_s0 = inlined_call_operand.vmem [shape: f32[2,3,8], index: 0, kind: input, shape index: {}]   ;;  %s682_s1 = inlined_call_operand.hbm [shape: f32[2,8,256], index: 1, kind: input, shape index: {}]   ;;  %s683_s2 = inlined_call_operand.vmem [shape: f32[3,1], index: 2, kind: input, shape index: {}]   ;;  %s684_s3 = inlined_call_operand.vmem [shape: f32[2,3,256], index: 3, kind: output, shape index: {}]  }
   0x1   :  { %10 = vsyncpa [#allocation3 + $0x1], 0  ;;  %s587_s12 = smov 0   ;;  %s589_s13 = smov 0  }
   0x2   :  { %s591_s14 = smov 0   ;;  %s593_s15 = smov 0  }
   0x3   :  { %s595_s16 = smov 0   ;;  %s597_s17 = smov 0  }
   0x4 LB: > { %s407_s18 = sadd.s32 4294967295, %s564_s17   ;;  %s28_s19 = sadd.s32 1, %s560_s16  ;;  %s564_s17 = sphi %s597_s17, %s16_s17   ;;  %s560_s16 = sphi %s595_s16, %s691_s16   ;;  %s556_s15 = sphi %s593_s15, %s690_s15   ;;  %s552_s14 = sphi %s591_s14, %s689_s14   ;;  %s548_s13 = sphi %s589_s13, %s688_s13   ;;  %s544_s12 = sphi %s587_s12, %s687_s12  }
   0x5   : > { %p30_p0 = scmp.ge.s32.totalorder %s28_s19, 2  ;;  %s63_s20 = sadd.s32 1, %s552_s14 }
   0x6   : > { %p70_p1 = scmp.ne.s32.totalorder %s552_s14, %s548_s13  ;;  %p71_p2 = scmp.eq.s32.totalorder %s564_s17, 0 }
   0x7   : > { %s693_s19 = smov (%p30_p0, %s28_s19), 0  ;;  %p76_p4 = scmp.ne.s32.totalorder %s548_s13, %s544_s12 }
   0x8   : > { %p623_p3 = por %p71_p2, %p70_p1  ;;  %s58_s22 = ssub.s32 %s560_s16, %s693_s19 }
   0x9   : > { %p77_p5 = scmp.eq.s32.totalorder %s407_s18, 0  ;;  %p61_p6 = scmp.eq.s32.totalorder %s58_s22, 0 }
   0xa   : > { %p433_p8 = scmp.lt.s32.totalorder %s564_s17, 2  ;;  %s159_s25 = sand.u32 1, %s552_s14  }
   0xb   : > { %p630_p7 = por %p77_p5, %p76_p4  ;;  %s425_s26 = sshll.u32 %s560_s16, 4 }
   0xc   : > { %s636_s24 = scalar_select %p61_p6, %s552_s14, %s63_s20  }
   0xd   : > { %s411_s27 = sshll.u32 %s159_s25, 4  ;;  %s170_s30 = scalar_lea.hbm %s682_s1, %s425_s26 }
   0xe   : > { %s172_s4 = sshll.u32 %s170_s30, 4  ;;  %s163_s5 = scalar_lea.vmem [#allocation2], %s411_s27  ;;  %s173_s4 = int_to_ptr.hbm [resolvable:$true] %s172_s4 }
   0xf   : > { %s174_s6 = sshll.u32 %s163_s5, 4  ;;  %p430_p9 = pnand %p433_p8, %p623_p3  ;;  %s175_s6 = int_to_ptr.vmem [resolvable:$true] %s174_s6 }
  0x10   : > { %p414_p10 = scmp.ge.s32.totalorder %s564_s17, 1  ;;  %p179_p11 = scmp.lt.s32.totalorder %s564_s17, 3 }
  0x11   : > { %s160_s7 = scalar_lea.sflag [#allocation3], %s159_s25 }
  0x12   : > { %432 = dma.hbm_to_vmem [thread:$0]  (!%p430_p9), %s173_s4, 256, %s175_s6, %s160_s7  }
  0x13   : > { %p180_p12 = pnand %p414_p10, %p179_p11 }
  0x14   : > { %s185_s8 = sand.u32 (!%p180_p12), 1, %s548_s13  }
  0x15   : > { %183 = sbr.rel (%p180_p12) target bundleno = 167 (0xa7), region = 32  ;;  %s415_s9 = sshll.u32 (!%p180_p12), %s185_s8, 4 }
  0x16   : > { %s186_s10 = scalar_lea.sflag (!%p180_p12), [#allocation3], %s185_s8  ;;  %s189_s11 = scalar_lea.vmem (!%p180_p12), [#allocation2], %s415_s9 }
  0x1a   : > { %539 = dma.done.wait (%p630_p7), %s186_s10, 256  }
  0x1b   : > { %541 = vsyncadd (%p630_p7), %s186_s10, 4294967040  ;;  %p221_p13 = scmp.lt.s32.totalorder %s556_s15, 1  ;;  %v566_v0 = vmov 0   ;;  %vm245_vm0 = vcmask 64512   ;;  %v237_v1 = vld [vmem:[%s189_s11] sm:$0xff]  ;;  %v238_v2 = vld [vmem:[%s189_s11 + $0x8] sm:$0xff] }
  0x1c   : > { %483 = vset.pattern.permute.xlu0 %v566_v0  ;;  %264 = vmatpush.msra.mxu0 %v237_v1  ;;  %v239_v4 = vld [vmem:[%s683_s2] sm:$0x7]  ;;  %vm296_vm1 = vcmask 1043456  }
  0x1d   : > { %s695_s15 = smov (!%p221_p13, %s556_s15), 1  ;;  %284 = vmatpush.msra.mxu1 %v238_v2  ;;  %242 = vperm.xlu0 %483, %v239_v4  }
  0x1e   : > { %s416_s12 = sshll.u32 %s695_s15, 2  ;;  %s426_s25 = sshll.u32 %s695_s15, 3 }
  0x1f   : > { %s224_s21 = scalar_lea.vmem %s681_s0, %s416_s12  ;;  %s234_s28 = scalar_lea.vmem %s684_s3, %s426_s25 }
  0x20   : > { %v236_v3 = vld [vmem:[%s224_s21] sm:$0x7] }
  0x21   : > { %419 = vmatmul.msk.f32.vlgmr.msra.gmra.mxu0 %vm245_vm0, %v236_v3  ;;  %420 = vmatmul.msk.f32.vlgmr.msra.gmra.mxu1 %vm245_vm0, %v236_v3 }
  0x8f   : > { %v243_v5 = vpop.permute.xlu0 %242 }
  0x9e   : > { %v266_v6 = vpop.f32.mrf.mxu0  ;;  %v286_v7 = vpop.f32.mrf.mxu1 }
  0x9f   : > { %v267_v8 = vadd.f32 %v266_v6, %v243_v5  ;;  %v287_v9 = vadd.f32 %v286_v7, %v243_v5 }
  0xa1   : > { %v422_v10 = vclamps-f32 %v287_v9, 256.0  ;;  %v421_v11 = vclamps-f32 %v267_v8, 256.0 }
  0xa3   : > { %v295_v12 = vrot.slane %v422_v10, 4 }
  0xa5   : > { %v297_v13 = vsel %vm296_vm1, %v421_v11, %v295_v12 }
  0xa6   : > { %299 = vst [vmem:[%s234_s28] sm:$0x77] %v297_v13 }
  0xa7 PF: > { %s16_s17 = sadd.s32 1, %s564_s17   ;;  %s687_s12 = smov %s548_s13 }
  0xa8   : > { %p13_p0 = scmp.ge.s32.totalorder %s16_s17, 4   ;;  %s688_s13 = smov %s552_s14 }
  0xa9   : > { %s689_s14 = smov %s636_s24  ;;  %s690_s15 = smov %s560_s16 }
  0xaa   : > { %s691_s16 = smov %s693_s19  ;;  %15 = sbr.rel (!%p13_p0) target bundleno = 4 (0x4), region = 75 }
  0xaf   :  { %330 = vsyncpa [#allocation3], 1 }
  0xb0   :  { %332 = vsyncpa [#allocation3 + $0x1], 1 }

</bundles_post_ra>
